<compile_context>
chip_gen: v7x
topology: tpu7x:2x2x1
jax: 0.10.0
libtpu: 0.0.40
codegen_flags: <defaults>
</compile_context>

<pallas_src>
import jax
import jax.numpy as jnp
from jax.experimental import pallas as pl
from jax.experimental.pallas import tpu as pltpu


_TILE = 512  # multiple of both 8 (sublane) and 128 (lane) -> always a legal block.


def _tile(m, target=_TILE):
    """Block size for a dimension of extent m: full array if small, else `target`."""
    if m <= target:
        return m, 1
    return target, pl.cdiv(m, target)


# ---------------------------------------------------------------------------
# Pallas kernels
# ---------------------------------------------------------------------------
def _conv_relu_pool_kernel(c00_ref, c01_ref, c10_ref, c11_ref, w_ref, b_ref, o_ref):
    """o = relu(max over 4 pool phases (W @ cols_phase) + b), f32 accumulation.

    Pooling commutes with bias-add and ReLU, so max-of-4-matmuls == conv->relu->pool.
    Output is (Cout, M_pooled): lane-dense along M.
    """
    w = w_ref[...]
    y = jnp.dot(w, c00_ref[...], preferred_element_type=jnp.float32)
    y = jnp.maximum(y, jnp.dot(w, c01_ref[...], preferred_element_type=jnp.float32))
    y = jnp.maximum(y, jnp.dot(w, c10_ref[...], preferred_element_type=jnp.float32))
    y = jnp.maximum(y, jnp.dot(w, c11_ref[...], preferred_element_type=jnp.float32))
    o_ref[...] = jnp.maximum(y + b_ref[...], 0.0).astype(o_ref.dtype)


def _mlp3_kernel(x_ref, w1_ref, b1_ref, w2_ref, b2_ref, w3_ref, b3_ref, o_ref):
    """Fused fc1->relu->fc2->relu->fc3->relu; bf16 matmuls, f32 accumulation."""
    h = jnp.dot(x_ref[...], w1_ref[...], preferred_element_type=jnp.float32)
    h = jnp.maximum(h + b1_ref[...], 0.0)
    h = jnp.dot(h.astype(jnp.bfloat16), w2_ref[...], preferred_element_type=jnp.float32)
    h = jnp.maximum(h + b2_ref[...], 0.0)
    h = jnp.dot(h.astype(jnp.bfloat16), w3_ref[...], preferred_element_type=jnp.float32)
    o_ref[...] = jnp.maximum(h + b3_ref[...], 0.0).astype(o_ref.dtype)


# ---------------------------------------------------------------------------
# Wrappers
# ---------------------------------------------------------------------------
# TODO(synk): the pool-phase im2col extraction below is still plain-XLA glue; a
# fully fused variant would shift windows in-kernel with pl.ds on a resident block.
def _pooled_im2col(x, kh, kw):
    """x: (Cin, B, H, W). Returns four (K, Mp) matrices (one per 2x2 pool phase),
    K ordered (kh, kw, cin) and M ordered (b, ph, pw), plus (PH, PW)."""
    cin, b, h, w = x.shape
    oh, ow = h - kh + 1, w - kw + 1
    ph, pw = oh // 2, ow // 2
    cols = []
    for dh in range(2):
        for dw in range(2):
            shifts = []
            for i in range(kh):
                for j in range(kw):
                    r0, c0 = i + dh, j + dw
                    shifts.append(x[:, :, r0:r0 + 2 * ph:2, c0:c0 + 2 * pw:2])
            stack = jnp.stack(shifts, axis=0)            # (KH*KW, Cin, B, PH, PW)
            cols.append(stack.reshape(kh * kw * cin, b * ph * pw))
    return cols, ph, pw


def conv_relu_pool(x, w_mat, b_col, kernel_size=5):
    """Fused Conv2d(valid, stride 1) -> ReLU -> MaxPool2d(2, 2).

    x:     (Cin, B, H, W) bf16, channel-major activations.
    w_mat: (Cout, KH*KW*Cin) bf16, pre-reordered at init.
    b_col: (Cout, 1) f32.
    Returns (Cout, B, PH, PW) bf16.
    """
    cin, bsz, h, w = x.shape
    cout, k = w_mat.shape
    cols, ph, pw = _pooled_im2col(x, kernel_size, kernel_size)
    mp = bsz * ph * pw
    tm, gm = _tile(mp)
    col_spec = pl.BlockSpec((k, tm), lambda i: (0, i))
    out = pl.pallas_call(
        _conv_relu_pool_kernel,
        out_shape=jax.ShapeDtypeStruct((cout, mp), jnp.bfloat16),
        grid=(gm,),
        in_specs=[col_spec, col_spec, col_spec, col_spec,
                  pl.BlockSpec((cout, k), lambda i: (0, 0)),
                  pl.BlockSpec((cout, 1), lambda i: (0, 0))],
        out_specs=pl.BlockSpec((cout, tm), lambda i: (0, i)),
        compiler_params=pltpu.CompilerParams(
            dimension_semantics=("parallel",),
            vmem_limit_bytes=32 * 1024 * 1024),
    )(*cols, w_mat, b_col)
    return out.reshape(cout, bsz, ph, pw)


def mlp3_relu(x, w1, b1, w2, b2, w3, b3):
    """Fused FC stack. x: (B, 400) bf16; w*: (in, out) bf16; b*: (1, out) f32."""
    m, k1 = x.shape
    n3 = w3.shape[1]
    tm, gm = _tile(m)

    def full(a):
        return pl.BlockSpec(a.shape, lambda i: (0, 0))

    return pl.pallas_call(
        _mlp3_kernel,
        out_shape=jax.ShapeDtypeStruct((m, n3), jnp.float32),
        grid=(gm,),
        in_specs=[pl.BlockSpec((tm, k1), lambda i: (i, 0)),
                  full(w1), full(b1), full(w2), full(b2), full(w3), full(b3)],
        out_specs=pl.BlockSpec((tm, n3), lambda i: (i, 0)),
        compiler_params=pltpu.CompilerParams(
            dimension_semantics=("parallel",),
            vmem_limit_bytes=32 * 1024 * 1024),
    )(x, w1, b1, w2, b2, w3, b3)


# ---------------------------------------------------------------------------
# Deterministic parameter init (PyTorch layout) + one-time kernel-layout prep
# ---------------------------------------------------------------------------
def init_params(key):
    ks = jax.random.split(key, 10)

    def init(k, shape, fan_in):
        return jax.random.normal(k, shape, jnp.float32) / jnp.sqrt(jnp.float32(fan_in))

    return {
        "w1": init(ks[0], (6, 3, 5, 5), 3 * 25),   "b1": init(ks[1], (6,), 3 * 25),
        "w2": init(ks[2], (16, 6, 5, 5), 6 * 25),  "b2": init(ks[3], (16,), 6 * 25),
        "wf1": init(ks[4], (120, 400), 400),       "bf1": init(ks[5], (120,), 400),
        "wf2": init(ks[6], (84, 120), 120),        "bf2": init(ks[7], (84,), 120),
        "wf3": init(ks[8], (10, 84), 84),          "bf3": init(ks[9], (10,), 84),
    }


def prepare_params(p):
    """Hoisted, one-time layout/dtype conversion (not repeated per forward)."""
    def conv_w(w):  # (Cout, Cin, KH, KW) -> (Cout, KH*KW*Cin), K order (kh, kw, cin)
        cout = w.shape[0]
        return jnp.transpose(w, (0, 2, 3, 1)).reshape(cout, -1).astype(jnp.bfloat16)

    return {
        "w1": conv_w(p["w1"]), "b1": p["b1"].reshape(-1, 1),
        "w2": conv_w(p["w2"]), "b2": p["b2"].reshape(-1, 1),
        "wf1": p["wf1"].T.astype(jnp.bfloat16), "bf1": p["bf1"].reshape(1, -1),
        "wf2": p["wf2"].T.astype(jnp.bfloat16), "bf2": p["bf2"].reshape(1, -1),
        "wf3": p["wf3"].T.astype(jnp.bfloat16), "bf3": p["bf3"].reshape(1, -1),
    }


# ---------------------------------------------------------------------------
# Forward
# ---------------------------------------------------------------------------
def usenet_forward(params, x):
    # x: (B, 3, 32, 32) f32 NCHW -> logits (B, 10) f32
    xc = jnp.transpose(x, (1, 0, 2, 3)).astype(jnp.bfloat16)        # (Cin, B, H, W)
    c1 = conv_relu_pool(xc, params["w1"], params["b1"])             # (6, B, 14, 14)
    c2 = conv_relu_pool(c1, params["w2"], params["b2"])             # (16, B, 5, 5)
    # PyTorch .view(-1, 16*5*5): features ordered (C, H, W) per batch element.
    flat = jnp.transpose(c2, (1, 0, 2, 3)).reshape(x.shape[0], -1)  # (B, 400) bf16
    return mlp3_relu(flat, params["wf1"], params["bf1"],
                     params["wf2"], params["bf2"],
                     params["wf3"], params["bf3"])                  # (B, 10) f32


if __name__ == "__main__":
    key = jax.random.PRNGKey(0)
    pkey, xkey = jax.random.split(key)
    params = prepare_params(init_params(pkey))
    # 32x32 input so the spatial pipeline yields 16*5*5 features before fc1.
    x = jax.random.normal(xkey, (2, 3, 32, 32), jnp.float32)

    out = jax.jit(usenet_forward)(params, x)
    jax.block_until_ready(out)
    assert out.shape == (2, 10), out.shape
    assert bool(jnp.all(jnp.isfinite(out)))
    print("KERNEL_OK")
</pallas_src>

<mosaic_0001>
module attributes {stable_mosaic.version = 11 : i64} {
  func.func @_conv_relu_pool_kernel(%arg0: i32, %arg1: memref<75x392xbf16, #tpu.memory_space<vmem>>, %arg2: memref<75x392xbf16, #tpu.memory_space<vmem>>, %arg3: memref<75x392xbf16, #tpu.memory_space<vmem>>, %arg4: memref<75x392xbf16, #tpu.memory_space<vmem>>, %arg5: memref<6x75xbf16, #tpu.memory_space<vmem>>, %arg6: memref<6x1xf32, #tpu.memory_space<vmem>>, %arg7: memref<6x392xbf16, #tpu.memory_space<vmem>>) attributes {dimension_semantics = [#tpu.dimension_semantics<parallel>], iteration_bounds = array<i64: 1>, scalar_prefetch = 0 : i64, scratch_operands = 0 : i64, tpu.core_type = #tpu.core_type<tc>, window_params = [{transform_indices = @transform_0, window_bounds = array<i64: 75, 392>}, {transform_indices = @transform_1, window_bounds = array<i64: 75, 392>}, {transform_indices = @transform_2, window_bounds = array<i64: 75, 392>}, {transform_indices = @transform_3, window_bounds = array<i64: 75, 392>}, {pipeline_mode = #tpu.pipeline_mode<synchronous>, transform_indices = @transform_4, window_bounds = array<i64: 6, 75>}, {pipeline_mode = #tpu.pipeline_mode<synchronous>, transform_indices = @transform_5, window_bounds = array<i64: 6, 1>}, {transform_indices = @transform_6, window_bounds = array<i64: 6, 392>}]} {
    %c0 = arith.constant 0 : index
    %c0_0 = arith.constant 0 : index
    %0 = vector.load %arg5[%c0, %c0_0] : memref<6x75xbf16, #tpu.memory_space<vmem>>, vector<6x75xbf16>
    %c0_1 = arith.constant 0 : index
    %c0_2 = arith.constant 0 : index
    %1 = vector.load %arg1[%c0_1, %c0_2] : memref<75x392xbf16, #tpu.memory_space<vmem>>, vector<75x392xbf16>
    %cst = arith.constant dense<0.000000e+00> : vector<6x392xf32>
    %2 = tpu.matmul %0, %1, %cst {dimension_numbers = #tpu.dot_dimension_numbers<[1], [0], [0], [1], [0, 0, 1, 1], [], []>} : vector<6x75xbf16>, vector<75x392xbf16>, vector<6x392xf32> -> vector<6x392xf32>
    %c0_3 = arith.constant 0 : index
    %c0_4 = arith.constant 0 : index
    %3 = vector.load %arg2[%c0_3, %c0_4] : memref<75x392xbf16, #tpu.memory_space<vmem>>, vector<75x392xbf16>
    %cst_5 = arith.constant dense<0.000000e+00> : vector<6x392xf32>
    %4 = tpu.matmul %0, %3, %cst_5 {dimension_numbers = #tpu.dot_dimension_numbers<[1], [0], [0], [1], [0, 0, 1, 1], [], []>} : vector<6x75xbf16>, vector<75x392xbf16>, vector<6x392xf32> -> vector<6x392xf32>
    %5 = arith.maximumf %2, %4 : vector<6x392xf32>
    %c0_6 = arith.constant 0 : index
    %c0_7 = arith.constant 0 : index
    %6 = vector.load %arg3[%c0_6, %c0_7] : memref<75x392xbf16, #tpu.memory_space<vmem>>, vector<75x392xbf16>
    %cst_8 = arith.constant dense<0.000000e+00> : vector<6x392xf32>
    %7 = tpu.matmul %0, %6, %cst_8 {dimension_numbers = #tpu.dot_dimension_numbers<[1], [0], [0], [1], [0, 0, 1, 1], [], []>} : vector<6x75xbf16>, vector<75x392xbf16>, vector<6x392xf32> -> vector<6x392xf32>
    %8 = arith.maximumf %5, %7 : vector<6x392xf32>
    %c0_9 = arith.constant 0 : index
    %c0_10 = arith.constant 0 : index
    %9 = vector.load %arg4[%c0_9, %c0_10] : memref<75x392xbf16, #tpu.memory_space<vmem>>, vector<75x392xbf16>
    %cst_11 = arith.constant dense<0.000000e+00> : vector<6x392xf32>
    %10 = tpu.matmul %0, %9, %cst_11 {dimension_numbers = #tpu.dot_dimension_numbers<[1], [0], [0], [1], [0, 0, 1, 1], [], []>} : vector<6x75xbf16>, vector<75x392xbf16>, vector<6x392xf32> -> vector<6x392xf32>
    %11 = arith.maximumf %8, %10 : vector<6x392xf32>
    %c0_12 = arith.constant 0 : index
    %c0_13 = arith.constant 0 : index
    %12 = vector.load %arg6[%c0_12, %c0_13] : memref<6x1xf32, #tpu.memory_space<vmem>>, vector<6x1xf32>
    %13 = vector.broadcast %12 : vector<6x1xf32> to vector<6x392xf32>
    %14 = arith.addf %11, %13 : vector<6x392xf32>
    %cst_14 = arith.constant 0.000000e+00 : f32
    %15 = vector.broadcast %cst_14 : f32 to vector<6x392xf32>
    %16 = arith.maximumf %14, %15 : vector<6x392xf32>
    %17 = arith.truncf %16 : vector<6x392xf32> to vector<6x392xbf16>
    %c0_15 = arith.constant 0 : index
    %c0_16 = arith.constant 0 : index
    %18 = vector.load %arg7[%c0_15, %c0_16] : memref<6x392xbf16, #tpu.memory_space<vmem>>, vector<6x392xbf16>
    tpu.vector_store %arg7[%c0_15, %c0_16], %17 {strides = array<i32>} : memref<6x392xbf16, #tpu.memory_space<vmem>>, vector<6x392xbf16>,
    return
  }
  func.func @transform_0(%arg0: i32) -> (i32, i32) {
    %c0_i32 = arith.constant 0 : i32
    %c0_i32_0 = arith.constant 0 : i32
    return %c0_i32, %arg0 : i32, i32
  }
  func.func @transform_1(%arg0: i32) -> (i32, i32) {
    %c0_i32 = arith.constant 0 : i32
    %c0_i32_0 = arith.constant 0 : i32
    return %c0_i32, %arg0 : i32, i32
  }
  func.func @transform_2(%arg0: i32) -> (i32, i32) {
    %c0_i32 = arith.constant 0 : i32
    %c0_i32_0 = arith.constant 0 : i32
    return %c0_i32, %arg0 : i32, i32
  }
  func.func @transform_3(%arg0: i32) -> (i32, i32) {
    %c0_i32 = arith.constant 0 : i32
    %c0_i32_0 = arith.constant 0 : i32
    return %c0_i32, %arg0 : i32, i32
  }
  func.func @transform_4(%arg0: i32) -> (i32, i32) {
    %c0_i32 = arith.constant 0 : i32
    %c0_i32_0 = arith.constant 0 : i32
    %c0_i32_1 = arith.constant 0 : i32
    return %c0_i32, %c0_i32_0 : i32, i32
  }
  func.func @transform_5(%arg0: i32) -> (i32, i32) {
    %c0_i32 = arith.constant 0 : i32
    %c0_i32_0 = arith.constant 0 : i32
    %c0_i32_1 = arith.constant 0 : i32
    return %c0_i32, %c0_i32_0 : i32, i32
  }
  func.func @transform_6(%arg0: i32) -> (i32, i32) {
    %c0_i32 = arith.constant 0 : i32
    %c0_i32_0 = arith.constant 0 : i32
    return %c0_i32, %arg0 : i32, i32
  }
}

module attributes {stable_mosaic.version = 11 : i64} {
  func.func @_conv_relu_pool_kernel(%arg0: i32, %arg1: memref<150x50xbf16, #tpu.memory_space<vmem>>, %arg2: memref<150x50xbf16, #tpu.memory_space<vmem>>, %arg3: memref<150x50xbf16, #tpu.memory_space<vmem>>, %arg4: memref<150x50xbf16, #tpu.memory_space<vmem>>, %arg5: memref<16x150xbf16, #tpu.memory_space<vmem>>, %arg6: memref<16x1xf32, #tpu.memory_space<vmem>>, %arg7: memref<16x50xbf16, #tpu.memory_space<vmem>>) attributes {dimension_semantics = [#tpu.dimension_semantics<parallel>], iteration_bounds = array<i64: 1>, scalar_prefetch = 0 : i64, scratch_operands = 0 : i64, tpu.core_type = #tpu.core_type<tc>, window_params = [{transform_indices = @transform_0, window_bounds = array<i64: 150, 50>}, {transform_indices = @transform_1, window_bounds = array<i64: 150, 50>}, {transform_indices = @transform_2, window_bounds = array<i64: 150, 50>}, {transform_indices = @transform_3, window_bounds = array<i64: 150, 50>}, {pipeline_mode = #tpu.pipeline_mode<synchronous>, transform_indices = @transform_4, window_bounds = array<i64: 16, 150>}, {pipeline_mode = #tpu.pipeline_mode<synchronous>, transform_indices = @transform_5, window_bounds = array<i64: 16, 1>}, {transform_indices = @transform_6, window_bounds = array<i64: 16, 50>}]} {
    %c0 = arith.constant 0 : index
    %c0_0 = arith.constant 0 : index
    %0 = vector.load %arg5[%c0, %c0_0] : memref<16x150xbf16, #tpu.memory_space<vmem>>, vector<16x150xbf16>
    %c0_1 = arith.constant 0 : index
    %c0_2 = arith.constant 0 : index
    %1 = vector.load %arg1[%c0_1, %c0_2] : memref<150x50xbf16, #tpu.memory_space<vmem>>, vector<150x50xbf16>
    %cst = arith.constant dense<0.000000e+00> : vector<16x50xf32>
    %2 = tpu.matmul %0, %1, %cst {dimension_numbers = #tpu.dot_dimension_numbers<[1], [0], [0], [1], [0, 0, 1, 1], [], []>} : vector<16x150xbf16>, vector<150x50xbf16>, vector<16x50xf32> -> vector<16x50xf32>
    %c0_3 = arith.constant 0 : index
    %c0_4 = arith.constant 0 : index
    %3 = vector.load %arg2[%c0_3, %c0_4] : memref<150x50xbf16, #tpu.memory_space<vmem>>, vector<150x50xbf16>
    %cst_5 = arith.constant dense<0.000000e+00> : vector<16x50xf32>
    %4 = tpu.matmul %0, %3, %cst_5 {dimension_numbers = #tpu.dot_dimension_numbers<[1], [0], [0], [1], [0, 0, 1, 1], [], []>} : vector<16x150xbf16>, vector<150x50xbf16>, vector<16x50xf32> -> vector<16x50xf32>
    %5 = arith.maximumf %2, %4 : vector<16x50xf32>
    %c0_6 = arith.constant 0 : index
    %c0_7 = arith.constant 0 : index
    %6 = vector.load %arg3[%c0_6, %c0_7] : memref<150x50xbf16, #tpu.memory_space<vmem>>, vector<150x50xbf16>
    %cst_8 = arith.constant dense<0.000000e+00> : vector<16x50xf32>
    %7 = tpu.matmul %0, %6, %cst_8 {dimension_numbers = #tpu.dot_dimension_numbers<[1], [0], [0], [1], [0, 0, 1, 1], [], []>} : vector<16x150xbf16>, vector<150x50xbf16>, vector<16x50xf32> -> vector<16x50xf32>
    %8 = arith.maximumf %5, %7 : vector<16x50xf32>
    %c0_9 = arith.constant 0 : index
    %c0_10 = arith.constant 0 : index
    %9 = vector.load %arg4[%c0_9, %c0_10] : memref<150x50xbf16, #tpu.memory_space<vmem>>, vector<150x50xbf16>
    %cst_11 = arith.constant dense<0.000000e+00> : vector<16x50xf32>
    %10 = tpu.matmul %0, %9, %cst_11 {dimension_numbers = #tpu.dot_dimension_numbers<[1], [0], [0], [1], [0, 0, 1, 1], [], []>} : vector<16x150xbf16>, vector<150x50xbf16>, vector<16x50xf32> -> vector<16x50xf32>
    %11 = arith.maximumf %8, %10 : vector<16x50xf32>
    %c0_12 = arith.constant 0 : index
    %c0_13 = arith.constant 0 : index
    %12 = vector.load %arg6[%c0_12, %c0_13] : memref<16x1xf32, #tpu.memory_space<vmem>>, vector<16x1xf32>
    %13 = vector.broadcast %12 : vector<16x1xf32> to vector<16x50xf32>
    %14 = arith.addf %11, %13 : vector<16x50xf32>
    %cst_14 = arith.constant 0.000000e+00 : f32
    %15 = vector.broadcast %cst_14 : f32 to vector<16x50xf32>
    %16 = arith.maximumf %14, %15 : vector<16x50xf32>
    %17 = arith.truncf %16 : vector<16x50xf32> to vector<16x50xbf16>
    %c0_15 = arith.constant 0 : index
    %c0_16 = arith.constant 0 : index
    %18 = vector.load %arg7[%c0_15, %c0_16] : memref<16x50xbf16, #tpu.memory_space<vmem>>, vector<16x50xbf16>
    tpu.vector_store %arg7[%c0_15, %c0_16], %17 {strides = array<i32>} : memref<16x50xbf16, #tpu.memory_space<vmem>>, vector<16x50xbf16>,
    return
  }
  func.func @transform_0(%arg0: i32) -> (i32, i32) {
    %c0_i32 = arith.constant 0 : i32
    %c0_i32_0 = arith.constant 0 : i32
    return %c0_i32, %arg0 : i32, i32
  }
  func.func @transform_1(%arg0: i32) -> (i32, i32) {
    %c0_i32 = arith.constant 0 : i32
    %c0_i32_0 = arith.constant 0 : i32
    return %c0_i32, %arg0 : i32, i32
  }
  func.func @transform_2(%arg0: i32) -> (i32, i32) {
    %c0_i32 = arith.constant 0 : i32
    %c0_i32_0 = arith.constant 0 : i32
    return %c0_i32, %arg0 : i32, i32
  }
  func.func @transform_3(%arg0: i32) -> (i32, i32) {
    %c0_i32 = arith.constant 0 : i32
    %c0_i32_0 = arith.constant 0 : i32
    return %c0_i32, %arg0 : i32, i32
  }
  func.func @transform_4(%arg0: i32) -> (i32, i32) {
    %c0_i32 = arith.constant 0 : i32
    %c0_i32_0 = arith.constant 0 : i32
    %c0_i32_1 = arith.constant 0 : i32
    return %c0_i32, %c0_i32_0 : i32, i32
  }
  func.func @transform_5(%arg0: i32) -> (i32, i32) {
    %c0_i32 = arith.constant 0 : i32
    %c0_i32_0 = arith.constant 0 : i32
    %c0_i32_1 = arith.constant 0 : i32
    return %c0_i32, %c0_i32_0 : i32, i32
  }
  func.func @transform_6(%arg0: i32) -> (i32, i32) {
    %c0_i32 = arith.constant 0 : i32
    %c0_i32_0 = arith.constant 0 : i32
    return %c0_i32, %arg0 : i32, i32
  }
}

module attributes {stable_mosaic.version = 11 : i64} {
  func.func @_mlp3_kernel(%arg0: i32, %arg1: memref<2x400xbf16, #tpu.memory_space<vmem>>, %arg2: memref<400x120xbf16, #tpu.memory_space<vmem>>, %arg3: memref<1x120xf32, #tpu.memory_space<vmem>>, %arg4: memref<120x84xbf16, #tpu.memory_space<vmem>>, %arg5: memref<1x84xf32, #tpu.memory_space<vmem>>, %arg6: memref<84x10xbf16, #tpu.memory_space<vmem>>, %arg7: memref<1x10xf32, #tpu.memory_space<vmem>>, %arg8: memref<2x10xf32, #tpu.memory_space<vmem>>) attributes {dimension_semantics = [#tpu.dimension_semantics<parallel>], iteration_bounds = array<i64: 1>, scalar_prefetch = 0 : i64, scratch_operands = 0 : i64, tpu.core_type = #tpu.core_type<tc>, window_params = [{transform_indices = @transform_0, window_bounds = array<i64: 2, 400>}, {pipeline_mode = #tpu.pipeline_mode<synchronous>, transform_indices = @transform_1, window_bounds = array<i64: 400, 120>}, {pipeline_mode = #tpu.pipeline_mode<synchronous>, transform_indices = @transform_2, window_bounds = array<i64: 1, 120>}, {pipeline_mode = #tpu.pipeline_mode<synchronous>, transform_indices = @transform_3, window_bounds = array<i64: 120, 84>}, {pipeline_mode = #tpu.pipeline_mode<synchronous>, transform_indices = @transform_4, window_bounds = array<i64: 1, 84>}, {pipeline_mode = #tpu.pipeline_mode<synchronous>, transform_indices = @transform_5, window_bounds = array<i64: 84, 10>}, {pipeline_mode = #tpu.pipeline_mode<synchronous>, transform_indices = @transform_6, window_bounds = array<i64: 1, 10>}, {transform_indices = @transform_7, window_bounds = array<i64: 2, 10>}]} {
    %c0 = arith.constant 0 : index
    %c0_0 = arith.constant 0 : index
    %0 = vector.load %arg1[%c0, %c0_0] : memref<2x400xbf16, #tpu.memory_space<vmem>>, vector<2x400xbf16>
    %c0_1 = arith.constant 0 : index
    %c0_2 = arith.constant 0 : index
    %1 = vector.load %arg2[%c0_1, %c0_2] : memref<400x120xbf16, #tpu.memory_space<vmem>>, vector<400x120xbf16>
    %cst = arith.constant dense<0.000000e+00> : vector<2x120xf32>
    %2 = tpu.matmul %0, %1, %cst {dimension_numbers = #tpu.dot_dimension_numbers<[1], [0], [0], [1], [0, 0, 1, 1], [], []>} : vector<2x400xbf16>, vector<400x120xbf16>, vector<2x120xf32> -> vector<2x120xf32>
    %c0_3 = arith.constant 0 : index
    %c0_4 = arith.constant 0 : index
    %3 = vector.load %arg3[%c0_3, %c0_4] : memref<1x120xf32, #tpu.memory_space<vmem>>, vector<1x120xf32>
    %4 = vector.broadcast %3 : vector<1x120xf32> to vector<2x120xf32>
    %5 = arith.addf %2, %4 : vector<2x120xf32>
    %cst_5 = arith.constant 0.000000e+00 : f32
    %6 = vector.broadcast %cst_5 : f32 to vector<2x120xf32>
    %7 = arith.maximumf %5, %6 : vector<2x120xf32>
    %8 = arith.truncf %7 : vector<2x120xf32> to vector<2x120xbf16>
    %c0_6 = arith.constant 0 : index
    %c0_7 = arith.constant 0 : index
    %9 = vector.load %arg4[%c0_6, %c0_7] : memref<120x84xbf16, #tpu.memory_space<vmem>>, vector<120x84xbf16>
    %cst_8 = arith.constant dense<0.000000e+00> : vector<2x84xf32>
    %10 = tpu.matmul %8, %9, %cst_8 {dimension_numbers = #tpu.dot_dimension_numbers<[1], [0], [0], [1], [0, 0, 1, 1], [], []>} : vector<2x120xbf16>, vector<120x84xbf16>, vector<2x84xf32> -> vector<2x84xf32>
    %c0_9 = arith.constant 0 : index
    %c0_10 = arith.constant 0 : index
    %11 = vector.load %arg5[%c0_9, %c0_10] : memref<1x84xf32, #tpu.memory_space<vmem>>, vector<1x84xf32>
    %12 = vector.broadcast %11 : vector<1x84xf32> to vector<2x84xf32>
    %13 = arith.addf %10, %12 : vector<2x84xf32>
    %cst_11 = arith.constant 0.000000e+00 : f32
    %14 = vector.broadcast %cst_11 : f32 to vector<2x84xf32>
    %15 = arith.maximumf %13, %14 : vector<2x84xf32>
    %16 = arith.truncf %15 : vector<2x84xf32> to vector<2x84xbf16>
    %c0_12 = arith.constant 0 : index
    %c0_13 = arith.constant 0 : index
    %17 = vector.load %arg6[%c0_12, %c0_13] : memref<84x10xbf16, #tpu.memory_space<vmem>>, vector<84x10xbf16>
    %cst_14 = arith.constant dense<0.000000e+00> : vector<2x10xf32>
    %18 = tpu.matmul %16, %17, %cst_14 {dimension_numbers = #tpu.dot_dimension_numbers<[1], [0], [0], [1], [0, 0, 1, 1], [], []>} : vector<2x84xbf16>, vector<84x10xbf16>, vector<2x10xf32> -> vector<2x10xf32>
    %c0_15 = arith.constant 0 : index
    %c0_16 = arith.constant 0 : index
    %19 = vector.load %arg7[%c0_15, %c0_16] : memref<1x10xf32, #tpu.memory_space<vmem>>, vector<1x10xf32>
    %20 = vector.broadcast %19 : vector<1x10xf32> to vector<2x10xf32>
    %21 = arith.addf %18, %20 : vector<2x10xf32>
    %cst_17 = arith.constant 0.000000e+00 : f32
    %22 = vector.broadcast %cst_17 : f32 to vector<2x10xf32>
    %23 = arith.maximumf %21, %22 : vector<2x10xf32>
    %c0_18 = arith.constant 0 : index
    %c0_19 = arith.constant 0 : index
    %24 = vector.load %arg8[%c0_18, %c0_19] : memref<2x10xf32, #tpu.memory_space<vmem>>, vector<2x10xf32>
    tpu.vector_store %arg8[%c0_18, %c0_19], %23 {strides = array<i32>} : memref<2x10xf32, #tpu.memory_space<vmem>>, vector<2x10xf32>,
    return
  }
  func.func @transform_0(%arg0: i32) -> (i32, i32) {
    %c0_i32 = arith.constant 0 : i32
    %c0_i32_0 = arith.constant 0 : i32
    return %arg0, %c0_i32 : i32, i32
  }
  func.func @transform_1(%arg0: i32) -> (i32, i32) {
    %c0_i32 = arith.constant 0 : i32
    %c0_i32_0 = arith.constant 0 : i32
    %c0_i32_1 = arith.constant 0 : i32
    return %c0_i32, %c0_i32_0 : i32, i32
  }
  func.func @transform_2(%arg0: i32) -> (i32, i32) {
    %c0_i32 = arith.constant 0 : i32
    %c0_i32_0 = arith.constant 0 : i32
    %c0_i32_1 = arith.constant 0 : i32
    return %c0_i32, %c0_i32_0 : i32, i32
  }
  func.func @transform_3(%arg0: i32) -> (i32, i32) {
    %c0_i32 = arith.constant 0 : i32
    %c0_i32_0 = arith.constant 0 : i32
    %c0_i32_1 = arith.constant 0 : i32
    return %c0_i32, %c0_i32_0 : i32, i32
  }
  func.func @transform_4(%arg0: i32) -> (i32, i32) {
    %c0_i32 = arith.constant 0 : i32
    %c0_i32_0 = arith.constant 0 : i32
    %c0_i32_1 = arith.constant 0 : i32
    return %c0_i32, %c0_i32_0 : i32, i32
  }
  func.func @transform_5(%arg0: i32) -> (i32, i32) {
    %c0_i32 = arith.constant 0 : i32
    %c0_i32_0 = arith.constant 0 : i32
    %c0_i32_1 = arith.constant 0 : i32
    return %c0_i32, %c0_i32_0 : i32, i32
  }
  func.func @transform_6(%arg0: i32) -> (i32, i32) {
    %c0_i32 = arith.constant 0 : i32
    %c0_i32_0 = arith.constant 0 : i32
    %c0_i32_1 = arith.constant 0 : i32
    return %c0_i32, %c0_i32_0 : i32, i32
  }
  func.func @transform_7(%arg0: i32) -> (i32, i32) {
    %c0_i32 = arith.constant 0 : i32
    %c0_i32_0 = arith.constant 0 : i32
    return %arg0, %c0_i32 : i32, i32
  }
}

</mosaic_0001>

<bundles_post_ra>
// kernel: usenet_forward.3
= control target key start
LH: loop header
LB: loop body
LE: loop exit
PB: predicated region body
PF: predicated region fallthrough
CT: control target
= control target key end

     0   :  { %v1139_v1 = vmov 0   ;;  %vm145_vm0 = vcmask 1044480   ;;  %vm146_vm1 = vcmask 1045504   ;;  %v1140_v10 = vmov 65535   ;;  %s1473_s0 = inlined_call_operand.vmem [shape: bf16[75,392], index: 0, kind: input, shape index: {}]   ;;  %s1474_s1 = inlined_call_operand.vmem [shape: bf16[75,392], index: 1, kind: input, shape index: {}]   ;;  %s1475_s4 = inlined_call_operand.vmem [shape: bf16[6,75], index: 4, kind: input, shape index: {}]   ;;  %s1476_s2 = inlined_call_operand.vmem [shape: bf16[75,392], index: 2, kind: input, shape index: {}]   ;;  %s1477_s3 = inlined_call_operand.vmem [shape: bf16[75,392], index: 3, kind: input, shape index: {}]   ;;  %s1478_s5 = inlined_call_operand.vmem [shape: f32[6,1], index: 5, kind: input, shape index: {}]   ;;  %s1479_s6 = inlined_call_operand.vmem [shape: bf16[6,392], index: 6, kind: output, shape index: {}]  }
   0x1   :  { %v1019_v0 = vld [vmem:[%s1473_s0 + $0x4] ss:$16 sps:$4 sm:$0xff]   ;;  %193 = vmatprep.mubr.bf16.mxu0 %v1139_v1  ;;  %234 = vmatprep.mubr.bf16.mxu1 %v1139_v1  ;;  %v1021_v2 = vld [vmem:[%s1473_s0 + $0xc] ss:$16 sps:$4 sm:$0xff]   ;;  %v1023_v3 = vld [vmem:[%s1473_s0] ss:$16 sps:$4 sm:$0xff]  }
   0x2   :  { %1018 = vset.pattern.permute.xlu0 %v1139_v1  ;;  %161 = vmatprep.subr.bf16.mxu0 %v1019_v0  ;;  %v1024_v4 = vld [vmem:[%s1473_s0 + $0x8] ss:$16 sps:$4 sm:$0xff]   ;;  %v1025_v5 = vld [vmem:[%s1473_s0 + $0x24] ss:$16 sps:$4 sm:$0xff]   ;;  %v1027_v6 = vld [vmem:[%s1473_s0 + $0x2c] ss:$16 sps:$4 sm:$0xff]  }
   0x3   :  { %202 = vmatprep.subr.bf16.mxu1 %v1021_v2  ;;  %162 = vmatpush1.bf16.msra.mxu0 %v1023_v3  ;;  %v1029_v7 = vld [vmem:[%s1473_s0 + $0x20] ss:$16 sps:$4 sm:$0xff]   ;;  %v1030_v8 = vld [vmem:[%s1473_s0 + $0x28] ss:$16 sps:$4 sm:$0xff]   ;;  %v1031_v9 = vld [vmem:[%s1473_s0 + $0x44] ss:$16 sps:$4 sm:$0xff]  }
   0x4   :  { %203 = vmatpush1.bf16.msra.mxu1 %v1024_v4  ;;  %163 = vmatprep.subr.bf16.mxu0 %v1025_v5  ;;  %v147_v11 = vsel %vm145_vm0, 4294967295, %v1140_v10  ;;  %v1033_v12 = vld [vmem:[%s1473_s0 + $0x4c] ss:$16 sps:$4 sm:$0xff]   ;;  %v1035_v13 = vld [vmem:[%s1473_s0 + $0x40] ss:$16 sps:$4 sm:$0xff]   ;;  %vm141_vm2 = vcmask 613376  }
   0x5   :  { %204 = vmatprep.subr.bf16.mxu1 %v1027_v6  ;;  %v1036_v14 = vld [vmem:[%s1473_s0 + $0x48] ss:$16 sps:$4 sm:$0xff]   ;;  %v1037_v15 = vld [vmem:[%s1473_s0 + $0x64] ss:$16 sps:$4 sm:$0xff]   ;;  %v1039_v16 = vld [vmem:[%s1473_s0 + $0x6c] ss:$16 sps:$4 sm:$0xff]  }
   0x6   :  { %v1041_v17 = vld [vmem:[%s1473_s0 + $0x60] ss:$16 sps:$4 sm:$0xff]   ;;  %v1042_v18 = vld [vmem:[%s1473_s0 + $0x68] ss:$16 sps:$4 sm:$0xff]   ;;  %v1227_v19 = vsel %vm146_vm1, %v147_v11, 0  ;;  %vm916_vm3 = vcmask 1042432  }
   0x7   :  { %164 = vmatpush1.bf16.msra.mxu0 %v1029_v7  ;;  %v1043_v20 = vld [vmem:[%s1473_s0 + $0x84] ss:$16 sps:$4 sm:$0x3f]   ;;  %v1045_v21 = vld [vmem:[%s1473_s0 + $0x8c] ss:$16 sps:$4 sm:$0x3f]  }
   0x8   :  { %205 = vmatpush1.bf16.msra.mxu1 %v1030_v8  ;;  %165 = vmatprep.subr.bf16.mxu0 %v1031_v9  ;;  %v153_v22 = vand.u32 %v1043_v20, %v1227_v19  ;;  %v1047_v23 = vld [vmem:[%s1473_s0 + $0x80] ss:$16 sps:$4 sm:$0x3f]   ;;  %v1048_v24 = vld [vmem:[%s1473_s0 + $0x88] ss:$16 sps:$4 sm:$0x3f]   ;;  %v159_v25 = vand.u32 %v1045_v21, %v1227_v19 }
   0x9   :  { %206 = vmatprep.subr.bf16.mxu1 %v1033_v12  ;;  %v150_v26 = vand.u32 %v1047_v23, %v1227_v19  ;;  %v156_v27 = vand.u32 %v1048_v24, %v1227_v19  ;;  %v1051_v28 = vld [vmem:[%s1474_s1 + $0x4] ss:$16 sps:$4 sm:$0xff]   ;;  %v1054_v29 = vld [vmem:[%s1474_s1 + $0xc] ss:$16 sps:$4 sm:$0xff]   ;;  %v1254_v30 = vld [vmem:[%s1475_s4] sm:$0x7] }
   0xa   :  { %v1049_v31 = vld [vmem:[%s1474_s1] ss:$16 sps:$4 sm:$0xff]   ;;  %v1052_v32 = vld [vmem:[%s1474_s1 + $0x8] ss:$16 sps:$4 sm:$0xff]   ;;  %v1057_v33 = vld [vmem:[%s1474_s1 + $0x24] ss:$16 sps:$4 sm:$0xff]  }
   0xb   :  { %166 = vmatpush1.bf16.msra.mxu0 %v1035_v13  ;;  %v1060_v34 = vld [vmem:[%s1474_s1 + $0x2c] ss:$16 sps:$4 sm:$0xff]   ;;  %v1055_v35 = vld [vmem:[%s1474_s1 + $0x20] ss:$16 sps:$4 sm:$0xff]   ;;  %v1058_v36 = vld [vmem:[%s1474_s1 + $0x28] ss:$16 sps:$4 sm:$0xff]  }
   0xc   :  { %207 = vmatpush1.bf16.msra.mxu1 %v1036_v14  ;;  %167 = vmatprep.subr.bf16.mxu0 %v1037_v15  ;;  %v1063_v37 = vld [vmem:[%s1474_s1 + $0x44] ss:$16 sps:$4 sm:$0xff]   ;;  %v1066_v38 = vld [vmem:[%s1474_s1 + $0x4c] ss:$16 sps:$4 sm:$0xff]   ;;  %v1061_v39 = vld [vmem:[%s1474_s1 + $0x40] ss:$16 sps:$4 sm:$0xff]  }
   0xd   :  { %208 = vmatprep.subr.bf16.mxu1 %v1039_v16  ;;  %v1064_v40 = vld [vmem:[%s1474_s1 + $0x48] ss:$16 sps:$4 sm:$0xff]   ;;  %v1069_v41 = vld [vmem:[%s1474_s1 + $0x64] ss:$16 sps:$4 sm:$0xff]   ;;  %v1072_v42 = vld [vmem:[%s1474_s1 + $0x6c] ss:$16 sps:$4 sm:$0xff]  }
   0xe   :  { %v1075_v43 = vld [vmem:[%s1474_s1 + $0x84] ss:$16 sps:$4 sm:$0x3f]   ;;  %v1078_v44 = vld [vmem:[%s1474_s1 + $0x8c] ss:$16 sps:$4 sm:$0x3f]  }
   0xf   :  { %168 = vmatpush1.bf16.msra.mxu0 %v1041_v17  ;;  %v1067_v45 = vld [vmem:[%s1474_s1 + $0x60] ss:$16 sps:$4 sm:$0xff]   ;;  %v1070_v47 = vld [vmem:[%s1474_s1 + $0x68] ss:$16 sps:$4 sm:$0xff]   ;;  %v363_v49 = vand.u32 %v1075_v43, %v1227_v19  ;;  %v369_v50 = vand.u32 %v1078_v44, %v1227_v19  ;;  %v1081_v53 = vld [vmem:[%s1476_s2 + $0x4] ss:$16 sps:$4 sm:$0xff]  }
  0x10   :  { %209 = vmatpush1.bf16.msra.mxu1 %v1042_v18  ;;  %169 = vmatprep.subr.bf16.mxu0 %v153_v22  ;;  %v1073_v46 = vld [vmem:[%s1474_s1 + $0x80] ss:$16 sps:$4 sm:$0x3f]   ;;  %v1076_v48 = vld [vmem:[%s1474_s1 + $0x88] ss:$16 sps:$4 sm:$0x3f]  }
  0x11   :  { %210 = vmatprep.subr.bf16.mxu1 %v159_v25  ;;  %v360_v51 = vand.u32 %v1073_v46, %v1227_v19  ;;  %v366_v52 = vand.u32 %v1076_v48, %v1227_v19  ;;  %v1084_v54 = vld [vmem:[%s1476_s2 + $0xc] ss:$16 sps:$4 sm:$0xff]   ;;  %v1079_v55 = vld [vmem:[%s1476_s2] ss:$16 sps:$4 sm:$0xff]   ;;  %v1082_v56 = vld [vmem:[%s1476_s2 + $0x8] ss:$16 sps:$4 sm:$0xff]  }
  0x12   :  { %v1087_v57 = vld [vmem:[%s1476_s2 + $0x24] ss:$16 sps:$4 sm:$0xff]   ;;  %v1090_v58 = vld [vmem:[%s1476_s2 + $0x2c] ss:$16 sps:$4 sm:$0xff]   ;;  %v1085_v59 = vld [vmem:[%s1476_s2 + $0x20] ss:$16 sps:$4 sm:$0xff]  }
  0x13   :  { %170 = vmatpush1.bf16.msra.mxu0 %v150_v26  ;;  %v1088_v60 = vld [vmem:[%s1476_s2 + $0x28] ss:$16 sps:$4 sm:$0xff]   ;;  %v1093_v61 = vld [vmem:[%s1476_s2 + $0x44] ss:$16 sps:$4 sm:$0xff]   ;;  %v1096_v62 = vld [vmem:[%s1476_s2 + $0x4c] ss:$16 sps:$4 sm:$0xff]  }
  0x14   :  { %211 = vmatpush1.bf16.msra.mxu1 %v156_v27  ;;  %371 = vmatprep.subr.bf16.mxu0 %v1051_v28  ;;  %v1091_v63 = vld [vmem:[%s1476_s2 + $0x40] ss:$16 sps:$4 sm:$0xff]   ;;  %v1094_v0 = vld [vmem:[%s1476_s2 + $0x48] ss:$16 sps:$4 sm:$0xff]   ;;  %v1099_v2 = vld [vmem:[%s1476_s2 + $0x64] ss:$16 sps:$4 sm:$0xff]  }
  0x15   :  { %412 = vmatprep.subr.bf16.mxu1 %v1054_v29  ;;  %v1102_v3 = vld [vmem:[%s1476_s2 + $0x6c] ss:$16 sps:$4 sm:$0xff]   ;;  %v1105_v4 = vld [vmem:[%s1476_s2 + $0x84] ss:$16 sps:$4 sm:$0x3f]   ;;  %vm917_vm4 = vcmask 63492  }
  0x16   :  { %944 = vmatmul.mubr.msk.bf16.vlgmr.msra.gmra.mrb[0].mxu0 %vm141_vm2, %v1254_v30  ;;  %v1108_v5 = vld [vmem:[%s1476_s2 + $0x8c] ss:$16 sps:$4 sm:$0x3f]   ;;  %v1097_v6 = vld [vmem:[%s1476_s2 + $0x60] ss:$16 sps:$4 sm:$0xff]   ;;  %v577_v10 = vand.u32 %v1105_v4, %v1227_v19  ;;  %vm918_vm5 = vmor %vm917_vm4, %vm916_vm3 }
  0x17   :  { %945 = vmatmul.mubr.msk.bf16.vlgmr.msra.gmra.mrb[0].mxu1 %vm141_vm2, %v1254_v30  ;;  %372 = vmatpush1.bf16.msra.mxu0 %v1049_v31  ;;  %v1100_v7 = vld [vmem:[%s1476_s2 + $0x68] ss:$16 sps:$4 sm:$0xff]   ;;  %v1103_v8 = vld [vmem:[%s1476_s2 + $0x80] ss:$16 sps:$4 sm:$0x3f]   ;;  %v583_v11 = vand.u32 %v1108_v5, %v1227_v19 }
  0x18   :  { %413 = vmatpush1.bf16.msra.mxu1 %v1052_v32  ;;  %373 = vmatprep.subr.bf16.mxu0 %v1057_v33  ;;  %v1106_v9 = vld [vmem:[%s1476_s2 + $0x88] ss:$16 sps:$4 sm:$0x3f]   ;;  %v885_v12 = vld [vmem:[%s1478_s5] sm:$0x3f]  ;;  %v574_v13 = vand.u32 %v1103_v8, %v1227_v19 }
  0x19   :  { %414 = vmatprep.subr.bf16.mxu1 %v1060_v34  ;;  %403 = vmatprep.mubr.bf16.mxu0 %v1139_v1  ;;  %v580_v14 = vand.u32 %v1106_v9, %v1227_v19  ;;  %v1111_v15 = vld [vmem:[%s1477_s3 + $0x4] ss:$16 sps:$4 sm:$0xff]   ;;  %v1114_v16 = vld [vmem:[%s1477_s3 + $0xc] ss:$16 sps:$4 sm:$0xff]   ;;  %v1109_v17 = vld [vmem:[%s1477_s3] ss:$16 sps:$4 sm:$0xff]  }
  0x1a   :  { %444 = vmatprep.mubr.bf16.mxu1 %v1139_v1  ;;  %888 = vperm.xlu0 %1018, %v885_v12   ;;  %v1112_v18 = vld [vmem:[%s1477_s3 + $0x8] ss:$16 sps:$4 sm:$0xff]   ;;  %v1117_v20 = vld [vmem:[%s1477_s3 + $0x24] ss:$16 sps:$4 sm:$0xff]   ;;  %v1120_v21 = vld [vmem:[%s1477_s3 + $0x2c] ss:$16 sps:$4 sm:$0xff]  }
  0x1b   :  { %374 = vmatpush1.bf16.msra.mxu0 %v1055_v35  ;;  %v1115_v22 = vld [vmem:[%s1477_s3 + $0x20] ss:$16 sps:$4 sm:$0xff]   ;;  %v1118_v23 = vld [vmem:[%s1477_s3 + $0x28] ss:$16 sps:$4 sm:$0xff]   ;;  %v1123_v24 = vld [vmem:[%s1477_s3 + $0x44] ss:$16 sps:$4 sm:$0xff]  }
  0x1c   :  { %415 = vmatpush1.bf16.msra.mxu1 %v1058_v36  ;;  %375 = vmatprep.subr.bf16.mxu0 %v1063_v37  ;;  %v1126_v25 = vld [vmem:[%s1477_s3 + $0x4c] ss:$16 sps:$4 sm:$0xff]   ;;  %v1121_v26 = vld [vmem:[%s1477_s3 + $0x40] ss:$16 sps:$4 sm:$0xff]   ;;  %v1124_v27 = vld [vmem:[%s1477_s3 + $0x48] ss:$16 sps:$4 sm:$0xff]  }
  0x1d   :  { %416 = vmatprep.subr.bf16.mxu1 %v1066_v38  ;;  %v1129_v28 = vld [vmem:[%s1477_s3 + $0x64] ss:$16 sps:$4 sm:$0xff]   ;;  %v1132_v29 = vld [vmem:[%s1477_s3 + $0x6c] ss:$16 sps:$4 sm:$0xff]   ;;  %v1127_v32 = vld [vmem:[%s1477_s3 + $0x60] ss:$16 sps:$4 sm:$0xff]  }
  0x1e   :  { %v1138_v31 = vld [vmem:[%s1477_s3 + $0x8c] ss:$16 sps:$4 sm:$0x3f]   ;;  %v1130_v33 = vld [vmem:[%s1477_s3 + $0x68] ss:$16 sps:$4 sm:$0xff]  }
  0x1f   :  { %376 = vmatpush1.bf16.msra.mxu0 %v1061_v39  ;;  %v1133_v34 = vld [vmem:[%s1477_s3 + $0x80] ss:$16 sps:$4 sm:$0x3f]   ;;  %v1136_v35 = vld [vmem:[%s1477_s3 + $0x88] ss:$16 sps:$4 sm:$0x3f]   ;;  %v797_v37 = vand.u32 %v1138_v31, %v1227_v19 }
  0x20   :  { %417 = vmatpush1.bf16.msra.mxu1 %v1064_v40  ;;  %377 = vmatprep.subr.bf16.mxu0 %v1069_v41  ;;  %v788_v38 = vand.u32 %v1133_v34, %v1227_v19  ;;  %v794_v39 = vand.u32 %v1136_v35, %v1227_v19 }
  0x21   :  { %418 = vmatprep.subr.bf16.mxu1 %v1072_v42 }
  0x23   :  { %378 = vmatpush1.bf16.msra.mxu0 %v1067_v45 }
  0x24   :  { %419 = vmatpush1.bf16.msra.mxu1 %v1070_v47  ;;  %379 = vmatprep.subr.bf16.mxu0 %v363_v49 }
  0x25   :  { %420 = vmatprep.subr.bf16.mxu1 %v369_v50 }
  0x27   :  { %380 = vmatpush1.bf16.msra.mxu0 %v360_v51 }
  0x28   :  { %421 = vmatpush1.bf16.msra.mxu1 %v366_v52  ;;  %585 = vmatprep.subr.bf16.mxu0 %v1081_v53 }
  0x29   :  { %626 = vmatprep.subr.bf16.mxu1 %v1084_v54 }
  0x2a   :  { %966 = vmatmul.mubr.msk.bf16.vlgmr.msra.gmra.mrb[4].mxu0 %vm141_vm2, %v1254_v30 }
  0x2b   :  { %967 = vmatmul.mubr.msk.bf16.vlgmr.msra.gmra.mrb[4].mxu1 %vm141_vm2, %v1254_v30  ;;  %586 = vmatpush1.bf16.msra.mxu0 %v1079_v55 }
  0x2c   :  { %627 = vmatpush1.bf16.msra.mxu1 %v1082_v56  ;;  %587 = vmatprep.subr.bf16.mxu0 %v1087_v57 }
  0x2d   :  { %628 = vmatprep.subr.bf16.mxu1 %v1090_v58  ;;  %617 = vmatprep.mubr.bf16.mxu0 %v1139_v1 }
  0x2e   :  { %658 = vmatprep.mubr.bf16.mxu1 %v1139_v1 }
  0x2f   :  { %588 = vmatpush1.bf16.msra.mxu0 %v1085_v59 }
  0x30   :  { %629 = vmatpush1.bf16.msra.mxu1 %v1088_v60  ;;  %589 = vmatprep.subr.bf16.mxu0 %v1093_v61 }
  0x31   :  { %630 = vmatprep.subr.bf16.mxu1 %v1096_v62 }
  0x33   :  { %590 = vmatpush1.bf16.msra.mxu0 %v1091_v63 }
  0x34   :  { %631 = vmatpush1.bf16.msra.mxu1 %v1094_v0  ;;  %591 = vmatprep.subr.bf16.mxu0 %v1099_v2 }
  0x35   :  { %632 = vmatprep.subr.bf16.mxu1 %v1102_v3 }
  0x37   :  { %592 = vmatpush1.bf16.msra.mxu0 %v1097_v6 }
  0x38   :  { %633 = vmatpush1.bf16.msra.mxu1 %v1100_v7  ;;  %593 = vmatprep.subr.bf16.mxu0 %v577_v10 }
  0x39   :  { %634 = vmatprep.subr.bf16.mxu1 %v583_v11 }
  0x3b   :  { %594 = vmatpush1.bf16.msra.mxu0 %v574_v13 }
  0x3c   :  { %635 = vmatpush1.bf16.msra.mxu1 %v580_v14  ;;  %799 = vmatprep.subr.bf16.mxu0 %v1111_v15 }
  0x3d   :  { %840 = vmatprep.subr.bf16.mxu1 %v1114_v16 }
  0x3e   :  { %988 = vmatmul.mubr.msk.bf16.vlgmr.msra.gmra.mrb[8].mxu0 %vm141_vm2, %v1254_v30 }
  0x3f   :  { %989 = vmatmul.mubr.msk.bf16.vlgmr.msra.gmra.mrb[8].mxu1 %vm141_vm2, %v1254_v30  ;;  %800 = vmatpush1.bf16.msra.mxu0 %v1109_v17 }
  0x40   :  { %841 = vmatpush1.bf16.msra.mxu1 %v1112_v18  ;;  %801 = vmatprep.subr.bf16.mxu0 %v1117_v20 }
  0x41   :  { %842 = vmatprep.subr.bf16.mxu1 %v1120_v21  ;;  %831 = vmatprep.mubr.bf16.mxu0 %v1139_v1 }
  0x42   :  { %872 = vmatprep.mubr.bf16.mxu1 %v1139_v1  ;;  %v1135_v1 = vld [vmem:[%s1477_s3 + $0x84] ss:$16 sps:$4 sm:$0x3f]  }
  0x43   :  { %802 = vmatpush1.bf16.msra.mxu0 %v1115_v22  ;;  %v791_v36 = vand.u32 %v1135_v1, %v1227_v19 }
  0x44   :  { %843 = vmatpush1.bf16.msra.mxu1 %v1118_v23  ;;  %803 = vmatprep.subr.bf16.mxu0 %v1123_v24 }
  0x45   :  { %844 = vmatprep.subr.bf16.mxu1 %v1126_v25 }
  0x47   :  { %804 = vmatpush1.bf16.msra.mxu0 %v1121_v26 }
  0x48   :  { %845 = vmatpush1.bf16.msra.mxu1 %v1124_v27  ;;  %805 = vmatprep.subr.bf16.mxu0 %v1129_v28 }
  0x49   :  { %846 = vmatprep.subr.bf16.mxu1 %v1132_v29 }
  0x4b   :  { %806 = vmatpush1.bf16.msra.mxu0 %v1127_v32 }
  0x4c   :  { %847 = vmatpush1.bf16.msra.mxu1 %v1130_v33  ;;  %807 = vmatprep.subr.bf16.mxu0 %v791_v36 }
  0x4d   :  { %848 = vmatprep.subr.bf16.mxu1 %v797_v37 }
  0x4f   :  { %808 = vmatpush1.bf16.msra.mxu0 %v788_v38 }
  0x50   :  { %849 = vmatpush1.bf16.msra.mxu1 %v794_v39 }
  0x52   :  { %1010 = vmatmul.mubr.msk.bf16.vlgmr.msra.gmra.mrb[12].mxu0 %vm141_vm2, %v1254_v30 }
  0x53   :  { %1011 = vmatmul.mubr.msk.bf16.vlgmr.msra.gmra.mrb[12].mxu1 %vm141_vm2, %v1254_v30 }
  0x99   :  { %v889_v7 = vpop.permute.xlu0 %888 }
  0xe9   :  { %v195_v40 = vpop.f32.mrb[0].mxu0 }
  0xea   :  { %v236_v41 = vpop.f32.mrb[0].mxu1  ;;  %v197_v42 = vpop.f32.mrb[1].mxu0 }
  0xeb   :  { %v238_v43 = vpop.f32.mrb[1].mxu1  ;;  %v199_v44 = vpop.f32.mrb[2].mxu0 }
  0xec   :  { %v240_v45 = vpop.f32.mrb[2].mxu1  ;;  %v200_v46 = vpop.f32.mrb[3].mxu0 }
  0xed   :  { %v241_v47 = vpop.f32.mrb[3].mxu1 }
  0xfd   :  { %v405_v48 = vpop.f32.mrb[4].mxu0 }
  0xfe   :  { %v446_v19 = vpop.f32.mrb[4].mxu1  ;;  %v453_v49 = vmax.f32 %v195_v40, %v405_v48  ;;  %v407_v51 = vpop.f32.mrb[5].mxu0 }
  0xff   :  { %v455_v50 = vmax.f32 %v236_v41, %v446_v19  ;;  %v448_v52 = vpop.f32.mrb[5].mxu1  ;;  %v454_v53 = vmax.f32 %v197_v42, %v407_v51  ;;  %v409_v55 = vpop.f32.mrb[6].mxu0 }
 0x100   :  { %v456_v54 = vmax.f32 %v238_v43, %v448_v52  ;;  %v450_v56 = vpop.f32.mrb[6].mxu1  ;;  %v410_v57 = vpop.f32.mrb[7].mxu0 }
 0x101   :  { %v451_v30 = vpop.f32.mrb[7].mxu1 }
 0x111   :  { %v619_v58 = vpop.f32.mrb[8].mxu0 }
 0x112   :  { %v660_v59 = vpop.f32.mrb[8].mxu1  ;;  %v667_v60 = vmax.f32 %v453_v49, %v619_v58  ;;  %v621_v62 = vpop.f32.mrb[9].mxu0 }
 0x113   :  { %v669_v61 = vmax.f32 %v455_v50, %v660_v59  ;;  %v662_v63 = vpop.f32.mrb[9].mxu1  ;;  %v668_v0 = vmax.f32 %v454_v53, %v621_v62  ;;  %v623_v3 = vpop.f32.mrb[10].mxu0 }
 0x114   :  { %v670_v2 = vmax.f32 %v456_v54, %v662_v63  ;;  %v664_v4 = vpop.f32.mrb[10].mxu1  ;;  %v624_v5 = vpop.f32.mrb[11].mxu0 }
 0x115   :  { %v665_v6 = vpop.f32.mrb[11].mxu1 }
 0x125   :  { %v833_v8 = vpop.f32.mrb[12].mxu0 }
 0x126   :  { %v874_v9 = vpop.f32.mrb[12].mxu1  ;;  %v881_v10 = vmax.f32 %v667_v60, %v833_v8  ;;  %v835_v12 = vpop.f32.mrb[13].mxu0 }
 0x127   :  { %v883_v11 = vmax.f32 %v669_v61, %v874_v9  ;;  %v876_v13 = vpop.f32.mrb[13].mxu1  ;;  %v882_v14 = vmax.f32 %v668_v0, %v835_v12  ;;  %v837_v16 = vpop.f32.mrb[14].mxu0 }
 0x128   :  { %v884_v15 = vmax.f32 %v670_v2, %v876_v13  ;;  %v878_v17 = vpop.f32.mrb[14].mxu1  ;;  %v891_v18 = vadd.f32 %v889_v7, %v881_v10  ;;  %v838_v21 = vpop.f32.mrb[15].mxu0 }
 0x129   :  { %v893_v20 = vadd.f32 %v889_v7, %v883_v11  ;;  %v879_v22 = vpop.f32.mrb[15].mxu1  ;;  %v892_v23 = vadd.f32 %v889_v7, %v882_v14 }
 0x12a   :  { %v894_v24 = vadd.f32 %v889_v7, %v884_v15  ;;  %v895_v25 = vmax.f32 %v891_v18, 0.0 }
 0x12b   :  { %v897_v26 = vmax.f32 %v893_v20, 0.0  ;;  %v896_v27 = vmax.f32 %v892_v23, 0.0 }
 0x12c   :  { %v898_v28 = vmax.f32 %v894_v24, 0.0 }
 0x12d   :  { %v1014_v29 = vpack.c.bf16 %v896_v27, %v895_v25 }
 0x12e   :  { %v1015_v1 = vpack.c.bf16 %v898_v28, %v897_v26 }
 0x12f   :  { %915 = vst [vmem:[%s1479_s6] sm:$0x77] %v1014_v29 }
 0x130   :  { %919 = vst.msk [vmem:[%s1479_s6 + $0x8] sm:$0x77] %vm918_vm5, %v1015_v1 }

// kernel: usenet_forward.4
= control target key start
LH: loop header
LB: loop body
LE: loop exit
PB: predicated region body
PF: predicated region fallthrough
CT: control target
= control target key end

     0   :  { %v652_v0 = vmov 0   ;;  %vm111_vm0 = vcmask 179200   ;;  %vm115_vm1 = vcmask 1042432   ;;  %vm550_vm2 = vcmask 404480   ;;  %s881_s0 = inlined_call_operand.vmem [shape: bf16[150,50], index: 0, kind: input, shape index: {}]   ;;  %s882_s1 = inlined_call_operand.vmem [shape: bf16[150,50], index: 1, kind: input, shape index: {}]   ;;  %s883_s4 = inlined_call_operand.vmem [shape: bf16[16,150], index: 4, kind: input, shape index: {}]   ;;  %s884_s2 = inlined_call_operand.vmem [shape: bf16[150,50], index: 2, kind: input, shape index: {}]   ;;  %s885_s3 = inlined_call_operand.vmem [shape: bf16[150,50], index: 3, kind: input, shape index: {}]   ;;  %s886_s5 = inlined_call_operand.vmem [shape: f32[16,1], index: 5, kind: input, shape index: {}]   ;;  %s887_s6 = inlined_call_operand.vmem [shape: bf16[16,50], index: 6, kind: output, shape index: {}]  }
   0x1   :  { %119 = vmatprep.subr.bf16.mxu0 %v652_v0  ;;  %239 = vmatprep.subr.bf16.mxu1 %v652_v0  ;;  %v609_v1 = vld [vmem:[%s881_s0] sm:$0xff]   ;;  %v611_v3 = vld [vmem:[%s881_s0 + $0x8] sm:$0xff]   ;;  %v613_v5 = vld [vmem:[%s881_s0 + $0x10] sm:$0xff]  }
   0x2   :  { %v610_v2 = vld [vmem:[%s882_s1] sm:$0xff]   ;;  %608 = vset.pattern.permute.xlu0 %v652_v0  ;;  %120 = vmatpush1.bf16.msra.mxu0 %v609_v1  ;;  %v612_v4 = vld [vmem:[%s882_s1 + $0x8] sm:$0xff]   ;;  %v614_v6 = vld [vmem:[%s882_s1 + $0x10] sm:$0xff]  }
   0x3   :  { %240 = vmatpush1.bf16.msra.mxu1 %v610_v2  ;;  %121 = vmatprep.subr.bf16.mxu0 %v652_v0  ;;  %v615_v7 = vld [vmem:[%s881_s0 + $0x18] sm:$0xff]   ;;  %v617_v9 = vld [vmem:[%s881_s0 + $0x20] sm:$0xff]   ;;  %v619_v11 = vld [vmem:[%s881_s0 + $0x28] sm:$0xff]  }
   0x4   :  { %241 = vmatprep.subr.bf16.mxu1 %v652_v0  ;;  %v616_v8 = vld [vmem:[%s882_s1 + $0x18] sm:$0xff]   ;;  %v618_v10 = vld [vmem:[%s882_s1 + $0x20] sm:$0xff]   ;;  %v620_v12 = vld [vmem:[%s882_s1 + $0x28] sm:$0xff]  }
   0x5   :  { %v629_v13 = vld [vmem:[%s883_s4 + $0x4] ss:$8 sps:$4 sm:$0xff]   ;;  %v621_v14 = vld [vmem:[%s881_s0 + $0x30] sm:$0xff]   ;;  %v623_v16 = vld [vmem:[%s881_s0 + $0x38] sm:$0xff]  }
   0x6   :  { %122 = vmatpush1.bf16.msra.mxu0 %v611_v3  ;;  %569 = vmatprep.mubr.msk.bf16.mxu0 %vm111_vm0, %v629_v13  ;;  %v622_v15 = vld [vmem:[%s882_s1 + $0x30] sm:$0xff]   ;;  %v624_v17 = vld [vmem:[%s882_s1 + $0x38] sm:$0xff]   ;;  %v627_v18 = vld [vmem:[%s881_s0 + $0x48] ss:$0 sps:$4 sm:$0x77]  }
   0x7   :  { %242 = vmatpush1.bf16.msra.mxu1 %v612_v4  ;;  %123 = vmatprep.subr.bf16.mxu0 %v652_v0  ;;  %v625_v19 = vld [vmem:[%s881_s0 + $0x40] sm:$0xff]   ;;  %v628_v20 = vld [vmem:[%s882_s1 + $0x48] ss:$0 sps:$4 sm:$0x77]   ;;  %v117_v22 = vsel %vm115_vm1, %v627_v18, 0  ;;  %v636_v31 = vld [vmem:[%s884_s2 + $0x10] sm:$0xff]  }
   0x8   :  { %243 = vmatprep.subr.bf16.mxu1 %v652_v0  ;;  %580 = vmatprep.mubr.msk.bf16.mxu1 %vm111_vm0, %v629_v13  ;;  %v626_v21 = vld [vmem:[%s882_s1 + $0x40] sm:$0xff]   ;;  %v237_v23 = vsel %vm115_vm1, %v628_v20, 0  ;;  %v634_v28 = vld [vmem:[%s884_s2 + $0x8] sm:$0xff]   ;;  %v637_v32 = vld [vmem:[%s885_s3 + $0x10] sm:$0xff]  }
   0x9   :  { %v779_v24 = vld [vmem:[%s883_s4] ss:$8 sps:$4 sm:$0xff]   ;;  %v638_v33 = vld [vmem:[%s884_s2 + $0x18] sm:$0xff]   ;;  %v644_v39 = vld [vmem:[%s884_s2 + $0x30] sm:$0xff]  }
   0xa   :  { %124 = vmatpush1.bf16.msra.mxu0 %v613_v5  ;;  %v632_v25 = vld [vmem:[%s884_s2] sm:$0xff]   ;;  %v527_v29 = vld [vmem:[%s886_s5 + $0x8] sm:$0xff]  ;;  %v639_v34 = vld [vmem:[%s885_s3 + $0x18] sm:$0xff]  }
   0xb   :  { %244 = vmatpush1.bf16.msra.mxu1 %v614_v6  ;;  %125 = vmatprep.subr.bf16.mxu0 %v652_v0  ;;  %v633_v26 = vld [vmem:[%s885_s3] sm:$0xff]   ;;  %v635_v30 = vld [vmem:[%s885_s3 + $0x8] sm:$0xff]   ;;  %v645_v40 = vld [vmem:[%s885_s3 + $0x30] sm:$0xff]  }
   0xc   :  { %245 = vmatprep.subr.bf16.mxu1 %v652_v0  ;;  %v526_v27 = vld [vmem:[%s886_s5] sm:$0xff]  ;;  %v642_v37 = vld [vmem:[%s884_s2 + $0x28] sm:$0xff]   ;;  %v646_v41 = vld [vmem:[%s884_s2 + $0x38] sm:$0xff]  }
   0xd   :  { %530 = vperm.xlu0 %608, %v526_v27   ;;  %v640_v35 = vld [vmem:[%s884_s2 + $0x20] sm:$0xff]   ;;  %v643_v38 = vld [vmem:[%s885_s3 + $0x28] sm:$0xff]   ;;  %v647_v42 = vld [vmem:[%s885_s3 + $0x38] sm:$0xff]  }
   0xe   :  { %126 = vmatpush1.bf16.msra.mxu0 %v615_v7  ;;  %v641_v36 = vld [vmem:[%s885_s3 + $0x20] sm:$0xff]   ;;  %v650_v45 = vld [vmem:[%s884_s2 + $0x48] ss:$0 sps:$4 sm:$0x77]  }
   0xf   :  { %246 = vmatpush1.bf16.msra.mxu1 %v616_v8  ;;  %127 = vmatprep.subr.bf16.mxu0 %v652_v0  ;;  %v648_v43 = vld [vmem:[%s884_s2 + $0x40] sm:$0xff]   ;;  %v651_v46 = vld [vmem:[%s885_s3 + $0x48] ss:$0 sps:$4 sm:$0x77]   ;;  %v359_v47 = vsel %vm115_vm1, %v650_v45, 0 }
  0x10   :  { %247 = vmatprep.subr.bf16.mxu1 %v652_v0  ;;  %v649_v44 = vld [vmem:[%s885_s3 + $0x40] sm:$0xff]   ;;  %v481_v48 = vsel %vm115_vm1, %v651_v46, 0 }
  0x11   :  { %535 = vperm.xlu0 %608, %v527_v29  }
  0x12   :  { %128 = vmatpush1.bf16.msra.mxu0 %v617_v9 }
  0x13   :  { %248 = vmatpush1.bf16.msra.mxu1 %v618_v10  ;;  %129 = vmatprep.subr.bf16.mxu0 %v652_v0 }
  0x14   :  { %249 = vmatprep.subr.bf16.mxu1 %v652_v0 }
  0x16   :  { %130 = vmatpush1.bf16.msra.mxu0 %v619_v11 }
  0x17   :  { %250 = vmatpush1.bf16.msra.mxu1 %v620_v12  ;;  %131 = vmatprep.subr.bf16.mxu0 %v652_v0 }
  0x18   :  { %251 = vmatprep.subr.bf16.mxu1 %v652_v0 }
  0x1a   :  { %132 = vmatpush1.bf16.msra.mxu0 %v621_v14 }
  0x1b   :  { %252 = vmatpush1.bf16.msra.mxu1 %v622_v15  ;;  %133 = vmatprep.subr.bf16.mxu0 %v652_v0 }
  0x1c   :  { %253 = vmatprep.subr.bf16.mxu1 %v652_v0 }
  0x1e   :  { %134 = vmatpush1.bf16.msra.mxu0 %v623_v16 }
  0x1f   :  { %254 = vmatpush1.bf16.msra.mxu1 %v624_v17  ;;  %135 = vmatprep.subr.bf16.mxu0 %v652_v0 }
  0x20   :  { %255 = vmatprep.subr.bf16.mxu1 %v652_v0 }
  0x22   :  { %136 = vmatpush1.bf16.msra.mxu0 %v625_v19 }
  0x23   :  { %256 = vmatpush1.bf16.msra.mxu1 %v626_v21  ;;  %137 = vmatprep.subr.bf16.mxu0 %v652_v0 }
  0x24   :  { %257 = vmatprep.subr.bf16.mxu1 %v652_v0 }
  0x26   :  { %138 = vmatpush1.bf16.msra.mxu0 %v117_v22 }
  0x27   :  { %258 = vmatpush1.bf16.msra.mxu1 %v237_v23  ;;  %361 = vmatprep.subr.bf16.mxu0 %v652_v0 }
  0x28   :  { %483 = vmatprep.subr.bf16.mxu1 %v652_v0 }
  0x29   :  { %152 = vmatmul.mubr.bf16.vlgmr.msra.gmra.mrb[0].mxu0 %v779_v24 }
  0x2a   :  { %272 = vmatmul.mubr.bf16.vlgmr.msra.gmra.mrb[0].mxu1 %v779_v24  ;;  %362 = vmatpush1.bf16.msra.mxu0 %v632_v25 }
  0x2b   :  { %484 = vmatpush1.bf16.msra.mxu1 %v633_v26  ;;  %363 = vmatprep.subr.bf16.mxu0 %v652_v0 }
  0x2c   :  { %485 = vmatprep.subr.bf16.mxu1 %v652_v0  ;;  %591 = vmatprep.mubr.msk.bf16.mxu0 %vm111_vm0, %v629_v13 }
  0x2d   :  { %602 = vmatprep.mubr.msk.bf16.mxu1 %vm111_vm0, %v629_v13 }
  0x2e   :  { %364 = vmatpush1.bf16.msra.mxu0 %v634_v28 }
  0x2f   :  { %486 = vmatpush1.bf16.msra.mxu1 %v635_v30  ;;  %365 = vmatprep.subr.bf16.mxu0 %v652_v0 }
  0x30   :  { %487 = vmatprep.subr.bf16.mxu1 %v652_v0 }
  0x32   :  { %366 = vmatpush1.bf16.msra.mxu0 %v636_v31 }
  0x33   :  { %488 = vmatpush1.bf16.msra.mxu1 %v637_v32  ;;  %367 = vmatprep.subr.bf16.mxu0 %v652_v0 }
  0x34   :  { %489 = vmatprep.subr.bf16.mxu1 %v652_v0 }
  0x36   :  { %368 = vmatpush1.bf16.msra.mxu0 %v638_v33 }
  0x37   :  { %490 = vmatpush1.bf16.msra.mxu1 %v639_v34  ;;  %369 = vmatprep.subr.bf16.mxu0 %v652_v0 }
  0x38   :  { %491 = vmatprep.subr.bf16.mxu1 %v652_v0 }
  0x3a   :  { %370 = vmatpush1.bf16.msra.mxu0 %v640_v35 }
  0x3b   :  { %492 = vmatpush1.bf16.msra.mxu1 %v641_v36  ;;  %371 = vmatprep.subr.bf16.mxu0 %v652_v0 }
  0x3c   :  { %493 = vmatprep.subr.bf16.mxu1 %v652_v0 }
  0x3e   :  { %372 = vmatpush1.bf16.msra.mxu0 %v642_v37 }
  0x3f   :  { %494 = vmatpush1.bf16.msra.mxu1 %v643_v38  ;;  %373 = vmatprep.subr.bf16.mxu0 %v652_v0 }
  0x40   :  { %495 = vmatprep.subr.bf16.mxu1 %v652_v0 }
  0x42   :  { %374 = vmatpush1.bf16.msra.mxu0 %v644_v39 }
  0x43   :  { %496 = vmatpush1.bf16.msra.mxu1 %v645_v40  ;;  %375 = vmatprep.subr.bf16.mxu0 %v652_v0 }
  0x44   :  { %497 = vmatprep.subr.bf16.mxu1 %v652_v0 }
  0x46   :  { %376 = vmatpush1.bf16.msra.mxu0 %v646_v41 }
  0x47   :  { %498 = vmatpush1.bf16.msra.mxu1 %v647_v42  ;;  %377 = vmatprep.subr.bf16.mxu0 %v652_v0 }
  0x48   :  { %499 = vmatprep.subr.bf16.mxu1 %v652_v0 }
  0x4a   :  { %378 = vmatpush1.bf16.msra.mxu0 %v648_v43 }
  0x4b   :  { %500 = vmatpush1.bf16.msra.mxu1 %v649_v44  ;;  %379 = vmatprep.subr.bf16.mxu0 %v652_v0 }
  0x4c   :  { %501 = vmatprep.subr.bf16.mxu1 %v652_v0 }
  0x4e   :  { %380 = vmatpush1.bf16.msra.mxu0 %v359_v47 }
  0x4f   :  { %502 = vmatpush1.bf16.msra.mxu1 %v481_v48 }
  0x51   :  { %394 = vmatmul.mubr.bf16.vlgmr.msra.gmra.mrb[4].mxu0 %v779_v24 }
  0x52   :  { %516 = vmatmul.mubr.bf16.vlgmr.msra.gmra.mrb[4].mxu1 %v779_v24 }
  0x8c   :  { %v531_v59 = vpop.permute.xlu0 %530 }
  0x90   :  { %v536_v9 = vpop.permute.xlu0 %535 }
  0xfc   :  { %v153_v49 = vpop.f32.mrb[0].mxu0 }
  0xfd   :  { %v273_v50 = vpop.f32.mrb[0].mxu1  ;;  %v155_v51 = vpop.f32.mrb[1].mxu0 }
  0xfe   :  { %v280_v52 = vmax.f32 %v153_v49, %v273_v50  ;;  %v275_v53 = vpop.f32.mrb[1].mxu1  ;;  %v156_v54 = vpop.f32.mrb[2].mxu0 }
  0xff   :  { %v276_v55 = vpop.f32.mrb[2].mxu1  ;;  %v158_v56 = vpop.f32.mrb[3].mxu0 }
 0x100   :  { %v281_v57 = vmax.f32 %v156_v54, %v276_v55  ;;  %v278_v58 = vpop.f32.mrb[3].mxu1 }
 0x124   :  { %v395_v60 = vpop.f32.mrb[4].mxu0 }
 0x125   :  { %v402_v61 = vmax.f32 %v280_v52, %v395_v60  ;;  %v517_v62 = vpop.f32.mrb[4].mxu1  ;;  %v397_v63 = vpop.f32.mrb[5].mxu0 }
 0x126   :  { %v519_v0 = vpop.f32.mrb[5].mxu1  ;;  %v398_v1 = vpop.f32.mrb[6].mxu0 }
 0x127   :  { %v524_v2 = vmax.f32 %v402_v61, %v517_v62  ;;  %v403_v3 = vmax.f32 %v281_v57, %v398_v1  ;;  %v520_v4 = vpop.f32.mrb[6].mxu1  ;;  %v400_v5 = vpop.f32.mrb[7].mxu0 }
 0x128   :  { %v522_v6 = vpop.f32.mrb[7].mxu1 }
 0x129   :  { %v538_v7 = vadd.f32 %v531_v59, %v524_v2  ;;  %v525_v8 = vmax.f32 %v403_v3, %v520_v4 }
 0x12b   :  { %v540_v10 = vmax.f32 %v538_v7, 0.0  ;;  %v539_v11 = vadd.f32 %v536_v9, %v525_v8 }
 0x12d   :  { %v605_v12 = vpack.c.bf16 %v540_v10, %v540_v10  ;;  %v541_v13 = vmax.f32 %v539_v11, 0.0 }
 0x12f   :  { %551 = vst.msk [vmem:[%s887_s6] sm:$0xf] %vm550_vm2, %v605_v12  ;;  %v606_v14 = vpack.c.bf16 %v541_v13, %v541_v13 }
 0x131   :  { %552 = vst.msk [vmem:[%s887_s6 + $0x4] sm:$0xf] %vm550_vm2, %v606_v14 }

// kernel: usenet_forward.5
= control target key start
LH: loop header
LB: loop body
LE: loop exit
PB: predicated region body
PF: predicated region fallthrough
CT: control target
= control target key end

     0   :  { %v771_v1 = vmov 0   ;;  %v98_v20 = vlaneseq  ;;  %v772_v25 = vmov 1966171168   ;;  %vm264_vm0 = vcmask 130048   ;;  %s982_s0 = inlined_call_operand.vmem [shape: bf16[2,400], index: 0, kind: input, shape index: {}]   ;;  %s983_s1 = inlined_call_operand.vmem [shape: bf16[400,120], index: 1, kind: input, shape index: {}]   ;;  %s984_s2 = inlined_call_operand.vmem [shape: f32[1,120], index: 2, kind: input, shape index: {}]   ;;  %s985_s3 = inlined_call_operand.vmem [shape: bf16[120,84], index: 3, kind: input, shape index: {}]   ;;  %s986_s4 = inlined_call_operand.vmem [shape: f32[1,84], index: 4, kind: input, shape index: {}]   ;;  %s987_s5 = inlined_call_operand.vmem [shape: bf16[84,10], index: 5, kind: input, shape index: {}]   ;;  %s988_s6 = inlined_call_operand.vmem [shape: f32[1,10], index: 6, kind: input, shape index: {}]   ;;  %s989_s7 = inlined_call_operand.hbm [shape: f32[2,10], index: 7, kind: output, shape index: {}]  }
   0x1   :  { %v708_v0 = vld [vmem:[%s983_s1 + $0x40] sm:$0xff]   ;;  %308 = vmatprep.subr.bf16.mxu1 %v771_v1  ;;  %v711_v4 = vld [vmem:[%s983_s1 + $0x48] sm:$0xff]   ;;  %v714_v7 = vld [vmem:[%s983_s1 + $0x50] sm:$0xff]   ;;  %v96_v26 = vunpack.c.l.s4 %v772_v25  ;;  %v773_v38 = vmov 0.0  }
   0x2   :  { %v709_v2 = vld [vmem:[%s983_s1 + $0x80] sm:$0xff]   ;;  %629 = vmatprep.subr.bf16.mxu0 %v708_v0  ;;  %v712_v5 = vld [vmem:[%s983_s1 + $0x88] sm:$0xff]   ;;  %v715_v8 = vld [vmem:[%s983_s1 + $0x90] sm:$0xff]   ;;  %v99_v27 = vshrl.u32 %v98_v20, 7 }
   0x3   :  { %v710_v3 = vld [vmem:[%s983_s1] sm:$0xff]   ;;  %309 = vmatpush1.bf16.msra.mxu1 %v709_v2  ;;  %v713_v6 = vld [vmem:[%s983_s1 + $0x8] sm:$0xff]   ;;  %v716_v9 = vld [vmem:[%s983_s1 + $0x10] sm:$0xff]   ;;  %v97_v30 = vunpack.c.0.s8 %v96_v26 }
   0x4   :  { %630 = vmatpush3.bf16.msra.mxu0 %v710_v3  ;;  %310 = vmatprep.subr.bf16.mxu1 %v771_v1  ;;  %v717_v10 = vld [vmem:[%s983_s1 + $0x58] sm:$0xff]   ;;  %v720_v13 = vld [vmem:[%s983_s1 + $0x60] sm:$0xff]   ;;  %v723_v16 = vld [vmem:[%s983_s1 + $0x68] sm:$0xff]  }
   0x5   :  { %631 = vmatprep.subr.bf16.mxu0 %v711_v4  ;;  %v718_v11 = vld [vmem:[%s983_s1 + $0x98] sm:$0xff]   ;;  %v721_v14 = vld [vmem:[%s983_s1 + $0xa0] sm:$0xff]   ;;  %v724_v17 = vld [vmem:[%s983_s1 + $0xa8] sm:$0xff]   ;;  %v100_v32 = vsub.s32 %v97_v30, %v99_v27 }
   0x6   :  { %v719_v12 = vld [vmem:[%s983_s1 + $0x18] sm:$0xff]   ;;  %v722_v15 = vld [vmem:[%s983_s1 + $0x20] sm:$0xff]   ;;  %v725_v18 = vld [vmem:[%s983_s1 + $0x28] sm:$0xff]  }
   0x7   :  { %311 = vmatpush1.bf16.msra.mxu1 %v712_v5  ;;  %v726_v19 = vld [vmem:[%s983_s1 + $0x70] sm:$0xff]   ;;  %v584_v23 = vld.sshfl [vmem:[%s982_s0] sm:$0x33 pattern:$0x75316420]  ;;  %v729_v24 = vld [vmem:[%s983_s1 + $0x78] sm:$0xff]  }
   0x8   :  { %632 = vmatpush3.bf16.msra.mxu0 %v713_v6  ;;  %312 = vmatprep.subr.bf16.mxu1 %v771_v1  ;;  %v727_v21 = vld [vmem:[%s983_s1 + $0xb0] sm:$0xff]   ;;  %v730_v28 = vld [vmem:[%s983_s1 + $0xb8] sm:$0xff]   ;;  %v94_v29 = vcombine.high %v584_v23, %v584_v23  ;;  %v732_v33 = vld [vmem:[%s983_s1 + $0xc0] sm:$0xff]   ;;  %v101_v36 = vrot.slane %v584_v23, %v100_v32 }
   0x9   :  { %633 = vmatprep.subr.bf16.mxu0 %v714_v7  ;;  %v728_v22 = vld [vmem:[%s983_s1 + $0x30] sm:$0xff]   ;;  %v731_v31 = vld [vmem:[%s983_s1 + $0x38] sm:$0xff]   ;;  %v733_v34 = vld [vmem:[%s985_s3] sm:$0xff]  }
   0xa   :  { %v108_v35 = vrot.slane %v94_v29, %v100_v32  ;;  %v109_v39 = vcombine.high %v101_v36, %v101_v36  ;;  %v734_v40 = vld [vmem:[%s985_s3 + $0x8] sm:$0xff]  }
   0xb   :  { %313 = vmatpush1.bf16.msra.mxu1 %v715_v8 }
   0xc   :  { %634 = vmatpush3.bf16.msra.mxu0 %v716_v9  ;;  %314 = vmatprep.subr.bf16.mxu1 %v771_v1  ;;  %v110_v37 = vcombine.high %v108_v35, %v108_v35 }
   0xd   :  { %635 = vmatprep.subr.bf16.mxu0 %v717_v10  ;;  %300 = vmatprep.mubr.bf16.mxu0 %v108_v35 }
   0xe   :  { %610 = vmatprep.mubr.msk.bf16.mxu1 %vm264_vm0, %v110_v37 }
   0xf   :  { %315 = vmatpush1.bf16.msra.mxu1 %v718_v11 }
  0x10   :  { %636 = vmatpush3.bf16.msra.mxu0 %v719_v12  ;;  %316 = vmatprep.subr.bf16.mxu1 %v771_v1 }
  0x11   :  { %637 = vmatprep.subr.bf16.mxu0 %v720_v13 }
  0x13   :  { %317 = vmatpush1.bf16.msra.mxu1 %v721_v14 }
  0x14   :  { %638 = vmatpush3.bf16.msra.mxu0 %v722_v15  ;;  %318 = vmatprep.subr.bf16.mxu1 %v771_v1 }
  0x15   :  { %639 = vmatprep.subr.bf16.mxu0 %v723_v16 }
  0x17   :  { %319 = vmatpush1.bf16.msra.mxu1 %v724_v17 }
  0x18   :  { %640 = vmatpush3.bf16.msra.mxu0 %v725_v18  ;;  %320 = vmatprep.subr.bf16.mxu1 %v771_v1 }
  0x19   :  { %641 = vmatprep.subr.bf16.mxu0 %v726_v19 }
  0x1b   :  { %321 = vmatpush1.bf16.msra.mxu1 %v727_v21 }
  0x1c   :  { %642 = vmatpush3.bf16.msra.mxu0 %v728_v22  ;;  %322 = vmatprep.subr.bf16.mxu1 %v771_v1 }
  0x1d   :  { %643 = vmatprep.subr.bf16.mxu0 %v729_v24 }
  0x1f   :  { %323 = vmatpush1.bf16.msra.mxu1 %v730_v28 }
  0x20   :  { %644 = vmatpush3.bf16.msra.mxu0 %v731_v31  ;;  %324 = vmatprep.subr.bf16.mxu1 %v771_v1 }
  0x21   :  { %667 = vmatprep.subr.bf16.mxu0 %v773_v38 }
  0x23   :  { %301 = vmatmul.mubr.bf16.vlgmr.msra.gmra.mrb[0].mxu0 %v101_v36  ;;  %325 = vmatpush1.bf16.msra.mxu1 %v732_v33 }
  0x24   :  { %668 = vmatpush3.bf16.msra.mxu0 %v733_v34 }
  0x25   :  { %12 = vsyncpa [#allocation3], 0  ;;  %669 = vmatprep.subr.bf16.mxu0 %v773_v38  ;;  %687 = vmatprep.subr.bf16.mxu1 %v773_v38  ;;  %v735_v41 = vld [vmem:[%s985_s3 + $0x10] sm:$0xff]   ;;  %v736_v42 = vld [vmem:[%s985_s3 + $0x18] sm:$0xff]   ;;  %vm421_vm1 = vcmask 1043456   ;;  %vm774_vm2 = vmmov 0  }
  0x26   :  { %341 = vmatmul.mubr.bf16.vlgmr.msra.gmra.mrb[0].mxu1 %v109_v39  ;;  %v737_v43 = vld [vmem:[%s985_s3 + $0x20] sm:$0xff]   ;;  %v738_v44 = vld [vmem:[%s985_s3 + $0x28] sm:$0xff]   ;;  %v739_v45 = vld [vmem:[%s985_s3 + $0x30] sm:$0xff]   ;;  %683 = vmatprep.mubr.msk.bf16.mxu0 %vm774_vm2, %v773_v38  ;;  %vm417_vm3 = vcmask 982016   ;;  %vm522_vm4 = vcmask 1041408   ;;  %vm518_vm5 = vcmask 687104  }
  0x27   :  { %v740_v46 = vld [vmem:[%s985_s3 + $0x38] ss:$0 sps:$4 sm:$0xff]   ;;  %699 = vmatprep.mubr.msk.bf16.mxu1 %vm774_vm2, %v773_v38  ;;  %v741_v48 = vld [vmem:[%s987_s5] sm:$0xff]   ;;  %v742_v49 = vld [vmem:[%s987_s5 + $0x8] sm:$0xff]   ;;  %vm567_vm6 = vcmask 74752  }
  0x28   :  { %670 = vmatpush3.bf16.msra.mxu0 %v734_v40  ;;  %v423_v47 = vsel %vm421_vm1, %v740_v46, 0  ;;  %688 = vmatpush3.bf16.msra.mxu1 %v741_v48  ;;  %v743_v50 = vld [vmem:[%s987_s5 + $0x10] sm:$0xff]   ;;  %v744_v51 = vld [vmem:[%s987_s5 + $0x18] sm:$0xff]   ;;  %v583_v54 = vld [vmem:[%s984_s2] ss:$0 sm:$0xff] }
  0x29   :  { %671 = vmatprep.subr.bf16.mxu0 %v773_v38  ;;  %689 = vmatprep.subr.bf16.mxu1 %v773_v38  ;;  %v745_v2 = vld [vmem:[%s987_s5 + $0x20] sm:$0xff]   ;;  %v746_v3 = vld [vmem:[%s987_s5 + $0x28] ss:$0 sps:$4 sm:$0x33]   ;;  %s775_s5 = smov [#allocation2]  }
  0x2a   :  { %v524_v4 = vsel %vm522_vm4, %v746_v3, 0  ;;  %v611_v5 = vld [vmem:[%s986_s4] ss:$0 sm:$0xff]  ;;  %s575_s12 = sshll.u32 %s775_s5, 4  ;;  %s576_s12 = int_to_ptr.vmem [resolvable:$true] %s575_s12 }
  0x2b   :  { %v621_v13 = vld [vmem:[%s988_s6] ss:$0 sm:$0xff]  ;;  %s747_s4 = scalar_lea.vmem %s576_s12, 32  ;;  %p752_p1 = scmp.lt.s32.totalorder %s576_s12, %s576_s12 }
  0x2c   :  { %672 = vmatpush3.bf16.msra.mxu0 %v735_v41  ;;  %690 = vmatpush3.bf16.msra.mxu1 %v742_v49  ;;  %p748_p0 = scmp.ne.s32.totalorder %s576_s12, %s747_s4  ;;  %p753_p2 = scmp.lt.s32.totalorder %s747_s4, %s747_s4 }
  0x2d   :  { %673 = vmatprep.subr.bf16.mxu0 %v773_v38  ;;  %691 = vmatprep.subr.bf16.mxu1 %v773_v38 }
  0x2e   :  { %p754_p3 = por %p753_p2, %p752_p1 }
  0x30   :  { %674 = vmatpush3.bf16.msra.mxu0 %v736_v42  ;;  %692 = vmatpush3.bf16.msra.mxu1 %v743_v50  ;;  %p755_p4 = pnand %p754_p3, %p748_p0 }
  0x31   :  { %675 = vmatprep.subr.bf16.mxu0 %v773_v38  ;;  %693 = vmatprep.subr.bf16.mxu1 %v773_v38 }
  0x34   :  { %676 = vmatpush3.bf16.msra.mxu0 %v737_v43  ;;  %694 = vmatpush3.bf16.msra.mxu1 %v744_v51 }
  0x35   :  { %677 = vmatprep.subr.bf16.mxu0 %v773_v38  ;;  %695 = vmatprep.subr.bf16.mxu1 %v773_v38 }
  0x38   :  { %678 = vmatpush3.bf16.msra.mxu0 %v738_v44  ;;  %696 = vmatpush3.bf16.msra.mxu1 %v745_v2 }
  0x39   :  { %679 = vmatprep.subr.bf16.mxu0 %v773_v38  ;;  %697 = vmatprep.subr.bf16.mxu1 %v773_v38 }
  0x3c   :  { %680 = vmatpush3.bf16.msra.mxu0 %v739_v45  ;;  %698 = vmatpush3.bf16.msra.mxu1 %v524_v4 }
  0x3d   :  { %681 = vmatprep.subr.bf16.mxu0 %v773_v38 }
  0x40   :  { %682 = vmatpush3.bf16.msra.mxu0 %v423_v47 }
  0xf6   :  { %v645_v52 = vpop.f32.mrb[0].mxu0 }
  0xf7   :  { %v646_v53 = vpop.f32.mrb[1].mxu0 }
  0xf8   :  { %v647_v55 = vadd.f32 %v646_v53, %v645_v52  ;;  %v648_v56 = vpop.f32.mrb[2].mxu0 }
  0xf9   :  { %v649_v57 = vpop.f32.mrb[3].mxu0  ;;  %v342_v58 = vpop.f32.mrb[0].mxu1 }
  0xfa   :  { %v303_v59 = vadd.f32 %v647_v55, %v583_v54  ;;  %v344_v60 = vpop.f32.mrb[1].mxu1 }
  0xfb   :  { %v345_v61 = vpop.f32.mrb[2].mxu1 }
  0xfc   :  { %v343_v62 = vadd.f32 %v342_v58, %v303_v59  ;;  %v346_v63 = vpop.f32.mrb[3].mxu1 }
  0xfe   :  { %v348_v0 = vmax.f32 %v343_v62, 0.0 }
 0x100   :  { %v349_v1 = vpack.c.bf16 %v348_v0, %v348_v0 }
 0x102   :  { %684 = vmatmul.mubr.msk.bf16.vlgmr.msra.gmra.mrb[4].mxu0 %vm417_vm3, %v349_v1 }
 0x1d5   :  { %v459_v6 = vpop.f32.mrb[4].mxu0 }
 0x1d6   :  { %v460_v7 = vadd.f32 %v611_v5, %v459_v6  ;;  %v685_v8 = vpop.f32.mrb[5].mxu0 }
 0x1d7   :  { %v462_v9 = vpop.f32.mrb[6].mxu0 }
 0x1d8   :  { %v465_v10 = vmax.f32 %v460_v7, 0.0  ;;  %v686_v11 = vpop.f32.mrb[7].mxu0 }
 0x1da   :  { %v466_v12 = vpack.c.bf16 %v465_v10, %v465_v10 }
 0x1dc   :  { %700 = vmatmul.mubr.msk.bf16.vlgmr.msra.gmra.mrb[4].mxu1 %vm518_vm5, %v466_v12 }
 0x2af   :  { %v560_v14 = vpop.f32.mrb[4].mxu1 }
 0x2b0   :  { %v561_v15 = vadd.f32 %v621_v13, %v560_v14  ;;  %v701_v16 = vpop.f32.mrb[5].mxu1 }
 0x2b1   :  { %v563_v17 = vpop.f32.mrb[6].mxu1 }
 0x2b2   :  { %v566_v18 = vmax.f32 %v561_v15, 0.0  ;;  %v702_v19 = vpop.f32.mrb[7].mxu1 }
 0x2b4   :  { %568 = vst.msk [vmem:[#allocation2] sm:$0x3] %vm567_vm6, %v566_v18 }
 0x2b5   :  { %758 = shalt.err (!%p755_p4)
}
 0x2b6   :  { %s759_s14 = scalar_lea.hbm %s989_s7, 32 }
 0x2b7   :  { %p760_p5 = scmp.ne.s32.totalorder %s989_s7, %s759_s14  ;;  %p763_p6 = scmp.lt.u32.totalorder %s759_s14, %s989_s7 }
 0x2b9   :  { %p765_p7 = pnand %p763_p6, %p760_p5 }
 0x2bb   :  { %768 = shalt.err (!%p765_p7)
}
 0x2bc   :  { %578 = dma.vmem_to_hbm [thread:$0]  %s576_s12, 32, %s989_s7, [#allocation3]  }
 0x2bd   :  { %769 = dma.done.wait [#allocation3], 32  }
 0x2be   :  { %770 = vsyncadd [#allocation3], 4294967264 }
 0x2bf   :  { %582 = vsyncpa [#allocation3], 1 }

</bundles_post_ra>
